<compile_context>
chip_gen: v5e
topology: v5e:2x2
jax: 0.10.0
libtpu: 0.0.40
codegen_flags: <defaults>
</compile_context>

<pallas_src>
import functools

import jax
import jax.numpy as jnp
from jax.experimental import pallas as pl
from jax.experimental.pallas import tpu as pltpu


def _classifier_kernel(x_ref, w_ref, b_ref, oh_ref, oht_ref, o_ref):
    # x_ref:  (TB, N*N_i)      w_ref:  (N*N_i, N*N_o)   b_ref: (1, N*N_o)
    # oh_ref: (N*N_o, N)       oht_ref:(N, N*N_o)       o_ref: (TB, N*N_o)
    x = x_ref[...].astype(jnp.float32)          # in-kernel upcast (no HBM copy)

    # One MXU call covering all N index-dependent dense layers (block-diag W).
    y = jnp.dot(x, w_ref[...], preferred_element_type=jnp.float32) + b_ref[...]

    # Global row max: subtracting one per-row constant cancels inside every
    # segment's log_softmax, and exp(z) <= 1 keeps f32 overflow-safe.
    m = jnp.max(y, axis=-1, keepdims=True)      # (TB, 1)
    z = y - m
    e = jnp.exp(z)                              # (TB, N*N_o)

    # Per-segment sums via one-hot matmul (MXU), log on the compact (TB, N),
    # then broadcast back to lane-dense width with the transposed one-hot.
    s = jnp.dot(e, oh_ref[...], preferred_element_type=jnp.float32)       # (TB, N)
    log_s = jnp.log(s)
    log_bcast = jnp.dot(log_s, oht_ref[...],
                        preferred_element_type=jnp.float32)               # (TB, N*N_o)

    o_ref[...] = z - log_bcast


def prepare_classifier_params(W, b):
    """One-time (per weight update) packing of parameters for the kernel.

    W: (N, N_i, N_o), b: (N, N_o) ->
      Wbd  : (N*N_i, N*N_o) block-diagonal f32 weight
      bflt : (1, N*N_o) f32 bias
      oh   : (N*N_o, N) f32 segment one-hot   (column n selects segment n)
      oht  : (N, N*N_o) f32 transposed one-hot
    """
    N, N_i, N_o = W.shape
    eye = jnp.eye(N, dtype=jnp.float32)
    Wbd = jnp.einsum('nij,nm->nimj', W.astype(jnp.float32), eye)
    Wbd = Wbd.reshape(N * N_i, N * N_o)
    bflt = b.astype(jnp.float32).reshape(1, N * N_o)
    seg = jnp.arange(N * N_o, dtype=jnp.int32) // N_o
    oh = (seg[:, None] == jnp.arange(N, dtype=jnp.int32)[None, :]).astype(jnp.float32)
    oht = oh.T
    return Wbd, bflt, oh, oht


@functools.partial(jax.jit, static_argnames=("N", "N_i", "N_o", "max_batch_tile"))
def classifier_forward(x, Wbd, bflt, oh, oht, *, N, N_i, N_o,
                       max_batch_tile=2048):
    """x: any shape whose trailing elements flatten to N*N_i per row.
    Returns (B, N, N_o) f32 log-probabilities, B = flattened batch."""
    # Natural layout: contiguous reshape only, keep the original dtype.
    x_flat = jnp.reshape(x, (-1, N * N_i))
    B = x_flat.shape[0]

    # Large batch tiles amortize per-step overhead; ragged last block is
    # masked by Pallas (no wrapper-side padding copy of x).
    TB = B if B <= max_batch_tile else max_batch_tile
    grid = (pl.cdiv(B, TB),)

    itemsize = jnp.dtype(x_flat.dtype).itemsize
    cost = pl.CostEstimate(
        flops=2 * B * (N * N_i) * (N * N_o) + 4 * B * N * N_o * N,
        transcendentals=B * N * N_o + B * N,                 # exp + log
        bytes_accessed=(B * N * N_i * itemsize               # x read
                        + N * N_i * N * N_o * 4              # W (block-diag) read
                        + N * N_o * 4                        # b read
                        + 2 * N * N_o * N * 4                # one-hots read
                        + B * N * N_o * 4),                  # out write
    )

    out_flat = pl.pallas_call(
        _classifier_kernel,
        out_shape=jax.ShapeDtypeStruct((B, N * N_o), jnp.float32),
        grid_spec=pltpu.PrefetchScalarGridSpec(
            num_scalar_prefetch=0,
            grid=grid,
            in_specs=[
                pl.BlockSpec((TB, N * N_i), lambda i: (i, 0)),        # x tile
                pl.BlockSpec((N * N_i, N * N_o), lambda i: (0, 0)),   # W resident
                pl.BlockSpec((1, N * N_o), lambda i: (0, 0)),         # b resident
                pl.BlockSpec((N * N_o, N), lambda i: (0, 0)),         # one-hot
                pl.BlockSpec((N, N * N_o), lambda i: (0, 0)),         # one-hot^T
            ],
            out_specs=pl.BlockSpec((TB, N * N_o), lambda i: (i, 0)),  # lane-dense
        ),
        compiler_params=pltpu.CompilerParams(
            dimension_semantics=("parallel",),
            # ~8-10 MiB live at TB=2048; 32 MiB cap is safe on v5e (128 MiB
            # phys), v6e (128 MiB) and v7x (64 MiB phys / 32 MiB default).
            vmem_limit_bytes=32 << 20,
        ),
        cost_estimate=cost,
    )(x_flat, Wbd, bflt, oh, oht)

    return out_flat.reshape(B, N, N_o)


def init_params(key, N, N_i, N_o):
    # Deterministic synthetic init. W: xavier_uniform (torch fan_in = N_i*N_o,
    # fan_out = N*N_o for a 3-D tensor). b: small uniform (torch leaves it empty).
    kw, kb = jax.random.split(key)
    bound = (6.0 / (N_i * N_o + N * N_o)) ** 0.5
    W = jax.random.uniform(kw, (N, N_i, N_o), jnp.float32, -bound, bound)
    b = jax.random.uniform(kb, (N, N_o), jnp.float32, -0.1, 0.1)
    return W, b


if __name__ == "__main__":
    N, N_i, N_o = 4, 16, 32

    key = jax.random.PRNGKey(0)
    kx, kp = jax.random.split(key)
    x = jax.random.normal(kx, (2, 4, 16, 16), jnp.float32)   # flattens to B=32 rows
    W, b = init_params(kp, N, N_i, N_o)

    # One-time parameter packing (per weight update), then the fast forward.
    Wbd, bflt, oh, oht = prepare_classifier_params(W, b)
    out = classifier_forward(x, Wbd, bflt, oh, oht, N=N, N_i=N_i, N_o=N_o)
    out = jax.block_until_ready(out)

    # reference check in plain JAX (mirrors the PyTorch forward)
    x3 = x.astype(jnp.float32).reshape(-1, N, N_i)
    ref_y = jnp.einsum('nij,bni->bnj', W, x3) + b
    ref = jax.nn.log_softmax(ref_y, axis=-1)
    assert out.shape == ref.shape
    assert jnp.allclose(out, ref, atol=1e-5, rtol=1e-5)

    print("KERNEL_OK")
</pallas_src>

<mosaic_0001>
module attributes {stable_mosaic.version = 11 : i64} {
  func.func @_classifier_kernel(%arg0: i32, %arg1: memref<32x64xf32, #tpu.memory_space<vmem>>, %arg2: memref<64x128xf32, #tpu.memory_space<vmem>>, %arg3: memref<1x128xf32, #tpu.memory_space<vmem>>, %arg4: memref<128x4xf32, #tpu.memory_space<vmem>>, %arg5: memref<4x128xf32, #tpu.memory_space<vmem>>, %arg6: memref<32x128xf32, #tpu.memory_space<vmem>>) attributes {dimension_semantics = [#tpu.dimension_semantics<parallel>], iteration_bounds = array<i64: 1>, scalar_prefetch = 0 : i64, scratch_operands = 0 : i64, tpu.core_type = #tpu.core_type<tc>, window_params = [{transform_indices = @transform_0, window_bounds = array<i64: 32, 64>}, {pipeline_mode = #tpu.pipeline_mode<synchronous>, transform_indices = @transform_1, window_bounds = array<i64: 64, 128>}, {pipeline_mode = #tpu.pipeline_mode<synchronous>, transform_indices = @transform_2, window_bounds = array<i64: 1, 128>}, {pipeline_mode = #tpu.pipeline_mode<synchronous>, transform_indices = @transform_3, window_bounds = array<i64: 128, 4>}, {pipeline_mode = #tpu.pipeline_mode<synchronous>, transform_indices = @transform_4, window_bounds = array<i64: 4, 128>}, {transform_indices = @transform_5, window_bounds = array<i64: 32, 128>}]} {
    %c0 = arith.constant 0 : index
    %c0_0 = arith.constant 0 : index
    %0 = vector.load %arg1[%c0, %c0_0] : memref<32x64xf32, #tpu.memory_space<vmem>>, vector<32x64xf32>
    %c0_1 = arith.constant 0 : index
    %c0_2 = arith.constant 0 : index
    %1 = vector.load %arg2[%c0_1, %c0_2] : memref<64x128xf32, #tpu.memory_space<vmem>>, vector<64x128xf32>
    %cst = arith.constant dense<0.000000e+00> : vector<32x128xf32>
    %2 = tpu.matmul %0, %1, %cst {dimension_numbers = #tpu.dot_dimension_numbers<[1], [0], [0], [1], [0, 0, 1, 1], [], []>} : vector<32x64xf32>, vector<64x128xf32>, vector<32x128xf32> -> vector<32x128xf32>
    %c0_3 = arith.constant 0 : index
    %c0_4 = arith.constant 0 : index
    %3 = vector.load %arg3[%c0_3, %c0_4] : memref<1x128xf32, #tpu.memory_space<vmem>>, vector<1x128xf32>
    %4 = vector.broadcast %3 : vector<1x128xf32> to vector<32x128xf32>
    %5 = arith.addf %2, %4 : vector<32x128xf32>
    %cst_5 = arith.constant dense<0xFF800000> : vector<32xf32>
    %6 = vector.multi_reduction <maximumf>, %5, %cst_5 [1] : vector<32x128xf32> to vector<32xf32>
    %7 = vector.shape_cast %6 : vector<32xf32> to vector<32x1xf32>
    %8 = vector.broadcast %7 : vector<32x1xf32> to vector<32x128xf32>
    %9 = arith.subf %5, %8 : vector<32x128xf32>
    %10 = math.exp %9 : vector<32x128xf32>
    %c0_6 = arith.constant 0 : index
    %c0_7 = arith.constant 0 : index
    %11 = vector.load %arg4[%c0_6, %c0_7] : memref<128x4xf32, #tpu.memory_space<vmem>>, vector<128x4xf32>
    %cst_8 = arith.constant dense<0.000000e+00> : vector<32x4xf32>
    %12 = tpu.matmul %10, %11, %cst_8 {dimension_numbers = #tpu.dot_dimension_numbers<[1], [0], [0], [1], [0, 0, 1, 1], [], []>} : vector<32x128xf32>, vector<128x4xf32>, vector<32x4xf32> -> vector<32x4xf32>
    %13 = math.log %12 : vector<32x4xf32>
    %c0_9 = arith.constant 0 : index
    %c0_10 = arith.constant 0 : index
    %14 = vector.load %arg5[%c0_9, %c0_10] : memref<4x128xf32, #tpu.memory_space<vmem>>, vector<4x128xf32>
    %cst_11 = arith.constant dense<0.000000e+00> : vector<32x128xf32>
    %15 = tpu.matmul %13, %14, %cst_11 {dimension_numbers = #tpu.dot_dimension_numbers<[1], [0], [0], [1], [0, 0, 1, 1], [], []>} : vector<32x4xf32>, vector<4x128xf32>, vector<32x128xf32> -> vector<32x128xf32>
    %16 = arith.subf %9, %15 : vector<32x128xf32>
    %c0_12 = arith.constant 0 : index
    %c0_13 = arith.constant 0 : index
    %17 = vector.load %arg6[%c0_12, %c0_13] : memref<32x128xf32, #tpu.memory_space<vmem>>, vector<32x128xf32>
    tpu.vector_store %arg6[%c0_12, %c0_13], %16 {strides = array<i32>} : memref<32x128xf32, #tpu.memory_space<vmem>>, vector<32x128xf32>,
    return
  }
  func.func @transform_0(%arg0: i32) -> (i32, i32) {
    %c0_i32 = arith.constant 0 : i32
    %c0_i32_0 = arith.constant 0 : i32
    return %arg0, %c0_i32 : i32, i32
  }
  func.func @transform_1(%arg0: i32) -> (i32, i32) {
    %c0_i32 = arith.constant 0 : i32
    %c0_i32_0 = arith.constant 0 : i32
    %c0_i32_1 = arith.constant 0 : i32
    return %c0_i32, %c0_i32_0 : i32, i32
  }
  func.func @transform_2(%arg0: i32) -> (i32, i32) {
    %c0_i32 = arith.constant 0 : i32
    %c0_i32_0 = arith.constant 0 : i32
    %c0_i32_1 = arith.constant 0 : i32
    return %c0_i32, %c0_i32_0 : i32, i32
  }
  func.func @transform_3(%arg0: i32) -> (i32, i32) {
    %c0_i32 = arith.constant 0 : i32
    %c0_i32_0 = arith.constant 0 : i32
    %c0_i32_1 = arith.constant 0 : i32
    return %c0_i32, %c0_i32_0 : i32, i32
  }
  func.func @transform_4(%arg0: i32) -> (i32, i32) {
    %c0_i32 = arith.constant 0 : i32
    %c0_i32_0 = arith.constant 0 : i32
    %c0_i32_1 = arith.constant 0 : i32
    return %c0_i32, %c0_i32_0 : i32, i32
  }
  func.func @transform_5(%arg0: i32) -> (i32, i32) {
    %c0_i32 = arith.constant 0 : i32
    %c0_i32_0 = arith.constant 0 : i32
    return %arg0, %c0_i32 : i32, i32
  }
}

</mosaic_0001>

<bundles_post_ra>
// kernel: classifier_forward.1
= control target key start
LH: loop header
LB: loop body
LE: loop exit
PB: predicated region body
PF: predicated region fallthrough
CT: control target
= control target key end

     0   :  { %vm36_vm0 = vcmask 523264   ;;  %vm165_vm1 = vcmask 1043456   ;;  %vm152_vm2 = vcmask 31744   ;;  %s388_s1 = inlined_call_operand.vmem [shape: f32[64,128], index: 1, kind: input, shape index: {}]   ;;  %s389_s2 = inlined_call_operand.vmem [shape: f32[1,128], index: 2, kind: input, shape index: {}]   ;;  %s390_s0 = inlined_call_operand.vmem [shape: f32[32,64], index: 0, kind: input, shape index: {}]   ;;  %s391_s3 = inlined_call_operand.vmem [shape: f32[128,4], index: 3, kind: input, shape index: {}]   ;;  %s392_s4 = inlined_call_operand.vmem [shape: f32[4,128], index: 4, kind: input, shape index: {}]   ;;  %s393_s5 = inlined_call_operand.vmem [shape: f32[32,128], index: 5, kind: output, shape index: {}]  }
   0x1   :  { %v31_v0 = vld [vmem:[%s388_s1 + $0x38] sm:$0xff]  ;;  %v30_v1 = vld [vmem:[%s388_s1 + $0x30] sm:$0xff]  ;;  %v29_v2 = vld [vmem:[%s388_s1 + $0x28] sm:$0xff] }
   0x2   :  { %57 = vmatpush.msra.mxu0 %v31_v0  ;;  %v28_v3 = vld [vmem:[%s388_s1 + $0x20] sm:$0xff]  ;;  %v27_v4 = vld [vmem:[%s388_s1 + $0x18] sm:$0xff]  ;;  %v26_v5 = vld [vmem:[%s388_s1 + $0x10] sm:$0xff] }
   0x3   :  { %v25_v6 = vld [vmem:[%s388_s1 + $0x8] sm:$0xff]  ;;  %v24_v7 = vld [vmem:[%s388_s1] sm:$0xff]  ;;  %v22_v10 = vld [vmem:[%s390_s0 + $0x10] sm:$0xff] }
   0x4   :  { %58 = vmatpush.msra.mxu0 %v30_v1  ;;  %v20_v8 = vld [vmem:[%s390_s0] sm:$0xff]  ;;  %v21_v9 = vld [vmem:[%s390_s0 + $0x8] sm:$0xff]  ;;  %v23_v11 = vld [vmem:[%s390_s0 + $0x18] sm:$0xff] }
   0x5   :  { %v113_v12 = vld [vmem:[%s391_s3 + $0x78] sm:$0xff]  ;;  %v112_v13 = vld [vmem:[%s391_s3 + $0x70] sm:$0xff]  ;;  %v235_v14 = vld [vmem:[%s389_s2] ss:$0 sm:$0xff] }
   0x6   :  { %59 = vmatpush.msra.mxu0 %v29_v2  ;;  %114 = vmatpush.msra.mxu1 %v113_v12  ;;  %v111_v15 = vld [vmem:[%s391_s3 + $0x68] sm:$0xff]  ;;  %v110_v16 = vld [vmem:[%s391_s3 + $0x60] sm:$0xff]  ;;  %v109_v19 = vld [vmem:[%s391_s3 + $0x58] sm:$0xff] }
   0x7   :  { %219 = vmatpush.msra.mxu3 %v113_v12  ;;  %v108_v20 = vld [vmem:[%s391_s3 + $0x50] sm:$0xff]  ;;  %v107_v21 = vld [vmem:[%s391_s3 + $0x48] sm:$0xff]  ;;  %v106_v22 = vld [vmem:[%s391_s3 + $0x40] sm:$0xff] }
   0x8   :  { %60 = vmatpush.msra.mxu0 %v28_v3  ;;  %115 = vmatpush.msra.mxu1 %v112_v13  ;;  %v105_v25 = vld [vmem:[%s391_s3 + $0x38] sm:$0xff]  ;;  %v104_v26 = vld [vmem:[%s391_s3 + $0x30] sm:$0xff]  ;;  %v103_v31 = vld [vmem:[%s391_s3 + $0x28] sm:$0xff] }
   0x9   :  { %220 = vmatpush.msra.mxu3 %v112_v13  ;;  %v102_v32 = vld [vmem:[%s391_s3 + $0x20] sm:$0xff]  ;;  %v101_v33 = vld [vmem:[%s391_s3 + $0x18] sm:$0xff]  ;;  %v100_v34 = vld [vmem:[%s391_s3 + $0x10] sm:$0xff] }
   0xa   :  { %61 = vmatpush.msra.mxu0 %v27_v4  ;;  %116 = vmatpush.msra.mxu1 %v111_v15  ;;  %v99_v35 = vld [vmem:[%s391_s3 + $0x8] sm:$0xff]  ;;  %v98_v36 = vld [vmem:[%s391_s3] sm:$0xff] }
   0xb   :  { %221 = vmatpush.msra.mxu3 %v111_v15  ;;  %v151_v53 = vld [vmem:[%s392_s4] sm:$0xf] }
   0xc   :  { %62 = vmatpush.msra.mxu0 %v26_v5  ;;  %117 = vmatpush.msra.mxu1 %v110_v16 }
   0xd   :  { %222 = vmatpush.msra.mxu3 %v110_v16  ;;  %214 = vmatpush.msk.msra.mxu2 %vm165_vm1, %v151_v53 }
   0xe   :  { %63 = vmatpush.msra.mxu0 %v25_v6  ;;  %118 = vmatpush.msra.mxu1 %v109_v19 }
   0xf   :  { %223 = vmatpush.msra.mxu3 %v109_v19 }
  0x10   :  { %64 = vmatpush.msra.mxu0 %v24_v7  ;;  %119 = vmatpush.msra.mxu1 %v108_v20 }
  0x11   :  { %210 = vmatmul.msk.f32.vlgmr.msra.gmra.mxu0 %vm36_vm0, %v20_v8  ;;  %224 = vmatpush.msra.mxu3 %v108_v20 }
  0x12   :  { %120 = vmatpush.msra.mxu1 %v107_v21 }
  0x13   :  { %225 = vmatpush.msra.mxu3 %v107_v21 }
  0x14   :  { %121 = vmatpush.msra.mxu1 %v106_v22 }
  0x15   :  { %226 = vmatpush.msra.mxu3 %v106_v22 }
  0x16   :  { %122 = vmatpush.msra.mxu1 %v105_v25 }
  0x17   :  { %227 = vmatpush.msra.mxu3 %v105_v25 }
  0x18   :  { %123 = vmatpush.msra.mxu1 %v104_v26 }
  0x19   :  { %211 = vmatmul.msk.f32.gmra.mxu0 %vm36_vm0, %v21_v9  ;;  %228 = vmatpush.msra.mxu3 %v104_v26 }
  0x1a   :  { %124 = vmatpush.msra.mxu1 %v103_v31 }
  0x1b   :  { %229 = vmatpush.msra.mxu3 %v103_v31 }
  0x1c   :  { %125 = vmatpush.msra.mxu1 %v102_v32 }
  0x1d   :  { %230 = vmatpush.msra.mxu3 %v102_v32 }
  0x1e   :  { %126 = vmatpush.msra.mxu1 %v101_v33 }
  0x1f   :  { %231 = vmatpush.msra.mxu3 %v101_v33 }
  0x20   :  { %127 = vmatpush.msra.mxu1 %v100_v34 }
  0x21   :  { %212 = vmatmul.msk.f32.gmra.mxu0 %vm36_vm0, %v22_v10  ;;  %232 = vmatpush.msra.mxu3 %v100_v34 }
  0x22   :  { %128 = vmatpush.msra.mxu1 %v99_v35 }
  0x23   :  { %233 = vmatpush.msra.mxu3 %v99_v35 }
  0x24   :  { %129 = vmatpush.msra.mxu1 %v98_v36 }
  0x25   :  { %234 = vmatpush.msra.mxu3 %v98_v36 }
  0x29   :  { %213 = vmatmul.msk.f32.gmra.mxu0 %vm36_vm0, %v23_v11 }
  0x8e   :  { %v66_v17 = vpop.f32.mrf.mxu0 }
  0x8f   :  { %v67_v18 = vadd.f32 %v235_v14, %v66_v17 }
  0x91   :  { %78 = vmax.xlane.f32.xlu0 %v67_v18 }
  0x96   :  { %v69_v23 = vpop.f32.mrf.mxu0 }
  0x97   :  { %v70_v24 = vadd.f32 %v235_v14, %v69_v23 }
  0x99   :  { %80 = vmax.xlane.f32.xlu0 %v70_v24 }
  0x9e   :  { %v72_v27 = vpop.f32.mrf.mxu0 }
  0x9f   :  { %v73_v28 = vadd.f32 %v235_v14, %v72_v27 }
  0xa1   :  { %82 = vmax.xlane.f32.xlu1 %v73_v28 }
  0xa6   :  { %v75_v29 = vpop.f32.mrf.mxu0 }
  0xa7   :  { %v76_v30 = vadd.f32 %v235_v14, %v75_v29 }
  0xa9   :  { %84 = vmax.xlane.f32.xlu1 %v76_v30 }
 0x104   :  { %v79_v37 = vpop.xlane.xlu0 %78 }
 0x105   :  { %v86_v38 = vsub.f32 %v67_v18, %v79_v37 }
 0x107   :  { %v90_v39 = vmul.f32 1.442695, %v86_v38 }
 0x109   :  { %236 = vpow2.f32 %v90_v39 }
 0x10c   :  { %v81_v40 = vpop.xlane.xlu0 %80 }
 0x10d   :  { %v87_v41 = vsub.f32 %v70_v24, %v81_v40 }
 0x10f   :  { %v237_v42 = vpop.eup %236  ;;  %v92_v43 = vmul.f32 1.442695, %v87_v41 }
 0x110   :  { %130 = vmatmul.f32.vlgmr.msra.gmra.mxu1 %v237_v42 }
 0x111   :  { %238 = vpow2.f32 %v92_v43 }
 0x114   :  { %v83_v44 = vpop.xlane.xlu1 %82 }
 0x115   :  { %v88_v45 = vsub.f32 %v73_v28, %v83_v44 }
 0x117   :  { %v239_v46 = vpop.eup %238  ;;  %v94_v47 = vmul.f32 1.442695, %v88_v45 }
 0x118   :  { %133 = vmatmul.f32.gmra.mxu1 %v239_v46 }
 0x119   :  { %240 = vpow2.f32 %v94_v47 }
 0x11c   :  { %v85_v48 = vpop.xlane.xlu1 %84 }
 0x11d   :  { %v89_v49 = vsub.f32 %v76_v30, %v85_v48 }
 0x11f   :  { %v241_v50 = vpop.eup %240  ;;  %v96_v51 = vmul.f32 1.442695, %v89_v49 }
 0x120   :  { %136 = vmatmul.f32.vlgmr.msra.gmra.mxu3 %v241_v50 }
 0x121   :  { %242 = vpow2.f32 %v96_v51 }
 0x127   :  { %v243_v52 = vpop.eup %242 }
 0x128   :  { %139 = vmatmul.f32.gmra.mxu3 %v243_v52 }
 0x18d   :  { %v131_v54 = vpop.f32.mrf.mxu1 }
 0x18e   :  { %244 = vlog2.f32 %v131_v54 }
 0x194   :  { %v245_v55 = vpop.eup %244 }
 0x195   :  { %v144_v56 = vmul.f32 0.6931472, %v245_v55  ;;  %v134_v57 = vpop.f32.mrf.mxu1 }
 0x196   :  { %246 = vlog2.f32 %v134_v57 }
 0x197   :  { %215 = vmatmul.msk.f32.vlgmr.msra.gmra.mxu2 %vm152_vm2, %v144_v56 }
 0x19c   :  { %v247_v58 = vpop.eup %246 }
 0x19d   :  { %v146_v59 = vmul.f32 0.6931472, %v247_v58 }
 0x19f   :  { %216 = vmatmul.msk.f32.gmra.mxu2 %vm152_vm2, %v146_v59 }
 0x1a3   :  { %v137_v60 = vpop.f32.mrf.mxu3 }
 0x1a4   :  { %248 = vlog2.f32 %v137_v60 }
 0x1aa   :  { %v249_v61 = vpop.eup %248 }
 0x1ab   :  { %v148_v62 = vmul.f32 0.6931472, %v249_v61  ;;  %v140_v63 = vpop.f32.mrf.mxu3 }
 0x1ac   :  { %250 = vlog2.f32 %v140_v63 }
 0x1ad   :  { %217 = vmatmul.msk.f32.gmra.mxu2 %vm152_vm2, %v148_v62 }
 0x1b2   :  { %v251_v0 = vpop.eup %250 }
 0x1b3   :  { %v150_v1 = vmul.f32 0.6931472, %v251_v0 }
 0x1b5   :  { %218 = vmatmul.msk.f32.gmra.mxu2 %vm152_vm2, %v150_v1 }
 0x21a   :  { %v186_v2 = vpop.f32.mrf.mxu2 }
 0x21b   :  { %v198_v3 = vsub.f32 %v86_v38, %v186_v2 }
 0x21d   :  { %202 = vst [vmem:[%s393_s5] sm:$0xff] %v198_v3 }
 0x222   :  { %v189_v4 = vpop.f32.mrf.mxu2 }
 0x223   :  { %v199_v5 = vsub.f32 %v87_v41, %v189_v4 }
 0x225   :  { %203 = vst [vmem:[%s393_s5 + $0x8] sm:$0xff] %v199_v5 }
 0x230   :  { %v192_v6 = vpop.f32.mrf.mxu2 }
 0x231   :  { %v200_v7 = vsub.f32 %v88_v45, %v192_v6 }
 0x233   :  { %204 = vst [vmem:[%s393_s5 + $0x10] sm:$0xff] %v200_v7 }
 0x238   :  { %v195_v8 = vpop.f32.mrf.mxu2 }
 0x239   :  { %v201_v9 = vsub.f32 %v89_v49, %v195_v8 }
 0x23b   :  { %205 = vst [vmem:[%s393_s5 + $0x18] sm:$0xff] %v201_v9 }

</bundles_post_ra>
